<compile_context>
chip_gen: v7x
topology: tpu7x:2x2x1
jax: 0.10.0
libtpu: 0.0.40
codegen_flags: <defaults>
</compile_context>

<pallas_src>
import functools

import jax
import jax.numpy as jnp
from jax.experimental import pallas as pl
from jax.experimental.pallas import tpu as pltpu

# config (small, consistent with the module's defaults conceptually)
VOCAB_SIZE = 64
EMBED_DIM = 32
HIDDEN_SIZE = 32
OUTPUT_CLASS = 4


def _rnn_classify_kernel(x_ref, w_ih_ref, w_hh_ref, b_ih_ref, b_hh_ref,
                         w_lin_ref, b_lin_ref, out_ref, *, T, B_pad):
    """Full RNN recurrence + final Linear on one VMEM-resident block.

    x_ref:     (T*B_pad, E)  embedded tokens, time-major, batch padded to 8
    w_ih_ref:  (E, H)        input->hidden weight (pre-transposed)
    w_hh_ref:  (H, H)        hidden->hidden weight (pre-transposed)
    b_ih_ref:  (1, H)
    b_hh_ref:  (1, H)
    w_lin_ref: (H, C_pad)    classifier weight (pre-transposed, lane-padded)
    b_lin_ref: (1, C_pad)
    out_ref:   (B_pad, C_pad) lane-dense logits slab
    """
    H = w_hh_ref.shape[1]

    # Combined bias computed once (algebraically identical to b_ih + b_hh
    # added every step).
    bias = b_ih_ref[...] + b_hh_ref[...]                            # (1, H)

    # Hoisted input projection: ONE matmul over all timesteps + a single
    # broadcast bias add. Nothing else shares the serial h-chain.
    xproj = jnp.dot(x_ref[...], w_ih_ref[...],
                    preferred_element_type=jnp.float32) + bias      # (T*B_pad, H)

    w_hh = w_hh_ref[...]
    h = jnp.zeros((B_pad, H), dtype=jnp.float32)

    # Fully unrolled recurrence (T is small and static). The per-step slice of
    # xproj is a static, sublane-aligned 8-row slice; h lives in vregs.
    for t in range(T):
        pre = xproj[t * B_pad:(t + 1) * B_pad, :] + jnp.dot(
            h, w_hh, preferred_element_type=jnp.float32)
        h = jnp.tanh(pre)

    # Final classifier; (B_pad, 128) store is fully lane-dense (no vst.msk).
    out_ref[...] = (jnp.dot(h, w_lin_ref[...],
                            preferred_element_type=jnp.float32)
                    + b_lin_ref[...])


def rnn_classify(tokens, embed_w, w_ih, w_hh, b_ih, b_hh, w_lin, b_lin):
    """tokens: (B, T) int32. Returns logits (B, C) float32."""
    B, T = tokens.shape
    E = embed_w.shape[1]
    H = w_hh.shape[0]
    C = w_lin.shape[0]

    B_pad = ((B + 7) // 8) * 8           # sublane multiple (>= 8)
    C_pad = ((C + 127) // 128) * 128     # lane-dense output slab

    # TODO(synk): fuse the embedding gather into the kernel (scalar-prefetch
    # tokens + in-kernel lookup on the VMEM-resident 8 KiB table) to drop this
    # wrapper-side gather/transpose HBM round trip.
    emb = jnp.take(embed_w.astype(jnp.float32), tokens, axis=0)     # (B, T, E)
    x_tbe = jnp.transpose(emb, (1, 0, 2))                           # (T, B, E)
    x_tbe = jnp.pad(x_tbe, ((0, 0), (0, B_pad - B), (0, 0)))        # (T, B_pad, E)
    x_flat = x_tbe.reshape(T * B_pad, E)                            # (T*B_pad, E)

    w_ih_t = w_ih.T.astype(jnp.float32)                             # (E, H)
    w_hh_t = w_hh.T.astype(jnp.float32)                             # (H, H)
    b_ih_r = b_ih.reshape(1, H).astype(jnp.float32)
    b_hh_r = b_hh.reshape(1, H).astype(jnp.float32)
    w_lin_t = jnp.pad(w_lin.T.astype(jnp.float32),
                      ((0, 0), (0, C_pad - C)))                     # (H, C_pad)
    b_lin_r = jnp.pad(b_lin.astype(jnp.float32),
                      (0, C_pad - C)).reshape(1, C_pad)             # (1, C_pad)

    kernel = functools.partial(_rnn_classify_kernel, T=T, B_pad=B_pad)

    # No grid: every operand is tiny and lives whole in VMEM. If B/T scale up,
    # add a batch grid axis here with dimension_semantics=("parallel",).
    def vmem_spec():
        return pl.BlockSpec(memory_space=pltpu.MemorySpace.VMEM)

    out = pl.pallas_call(
        kernel,
        out_shape=jax.ShapeDtypeStruct((B_pad, C_pad), jnp.float32),
        in_specs=[vmem_spec() for _ in range(7)],
        out_specs=vmem_spec(),
    )(x_flat, w_ih_t, w_hh_t, b_ih_r, b_hh_r, w_lin_t, b_lin_r)

    return out[:B, :C]


def _reference(tokens, embed_w, w_ih, w_hh, b_ih, b_hh, w_lin, b_lin):
    """Pure-JAX reference mirroring torch.nn.RNN(batch_first=True) forward."""
    emb = jnp.take(embed_w, tokens, axis=0)            # (B, T, E)
    B, T, E = emb.shape
    H = w_hh.shape[0]
    h = jnp.zeros((B, H), jnp.float32)
    for t in range(T):
        h = jnp.tanh(emb[:, t, :] @ w_ih.T + b_ih + h @ w_hh.T + b_hh)
    return h @ w_lin.T + b_lin


if __name__ == "__main__":
    B, T = 2, 8
    initrange = 0.5
    key = jax.random.PRNGKey(0)
    k_tok, k_emb, k_ih, k_hh, k_bih, k_bhh, k_lin = jax.random.split(key, 7)

    tokens = jax.random.randint(k_tok, (B, T), 0, VOCAB_SIZE, dtype=jnp.int32)

    # Deterministic init mirroring RNNClassify.init_weights():
    embed_w = jax.random.uniform(k_emb, (VOCAB_SIZE, EMBED_DIM),
                                 minval=-initrange, maxval=initrange)
    w_ih = jax.random.uniform(k_ih, (HIDDEN_SIZE, EMBED_DIM),
                              minval=-initrange, maxval=initrange)
    w_hh = jax.random.uniform(k_hh, (HIDDEN_SIZE, HIDDEN_SIZE),
                              minval=-initrange, maxval=initrange)
    # RNN biases keep PyTorch's default U(-1/sqrt(H), 1/sqrt(H)) (not touched
    # by init_weights); reproduced here deterministically.
    brange = 1.0 / (HIDDEN_SIZE ** 0.5)
    b_ih = jax.random.uniform(k_bih, (HIDDEN_SIZE,), minval=-brange, maxval=brange)
    b_hh = jax.random.uniform(k_bhh, (HIDDEN_SIZE,), minval=-brange, maxval=brange)
    w_lin = jax.random.uniform(k_lin, (OUTPUT_CLASS, HIDDEN_SIZE),
                               minval=-initrange, maxval=initrange)
    b_lin = jnp.zeros((OUTPUT_CLASS,), jnp.float32)

    out = rnn_classify(tokens, embed_w, w_ih, w_hh, b_ih, b_hh, w_lin, b_lin)
    out = jax.block_until_ready(out)

    ref = _reference(tokens, embed_w, w_ih, w_hh, b_ih, b_hh, w_lin, b_lin)
    assert out.shape == (B, OUTPUT_CLASS)
    assert jnp.allclose(out, ref, atol=1e-5, rtol=1e-5)

    print("KERNEL_OK")
</pallas_src>

<mosaic_0001>
module attributes {stable_mosaic.version = 11 : i64} {
  func.func @_rnn_classify_kernel(%arg0: memref<64x32xf32, #tpu.memory_space<vmem>>, %arg1: memref<32x32xf32, #tpu.memory_space<vmem>>, %arg2: memref<32x32xf32, #tpu.memory_space<vmem>>, %arg3: memref<1x32xf32, #tpu.memory_space<vmem>>, %arg4: memref<1x32xf32, #tpu.memory_space<vmem>>, %arg5: memref<32x128xf32, #tpu.memory_space<vmem>>, %arg6: memref<1x128xf32, #tpu.memory_space<vmem>>, %arg7: memref<8x128xf32, #tpu.memory_space<vmem>>) attributes {dimension_semantics = [], scalar_prefetch = 0 : i64, scratch_operands = 0 : i64, tpu.core_type = #tpu.core_type<tc>} {
    %c0 = arith.constant 0 : index
    %c0_0 = arith.constant 0 : index
    %0 = vector.load %arg3[%c0, %c0_0] : memref<1x32xf32, #tpu.memory_space<vmem>>, vector<1x32xf32>
    %c0_1 = arith.constant 0 : index
    %c0_2 = arith.constant 0 : index
    %1 = vector.load %arg4[%c0_1, %c0_2] : memref<1x32xf32, #tpu.memory_space<vmem>>, vector<1x32xf32>
    %2 = arith.addf %0, %1 : vector<1x32xf32>
    %c0_3 = arith.constant 0 : index
    %c0_4 = arith.constant 0 : index
    %3 = vector.load %arg0[%c0_3, %c0_4] : memref<64x32xf32, #tpu.memory_space<vmem>>, vector<64x32xf32>
    %c0_5 = arith.constant 0 : index
    %c0_6 = arith.constant 0 : index
    %4 = vector.load %arg1[%c0_5, %c0_6] : memref<32x32xf32, #tpu.memory_space<vmem>>, vector<32x32xf32>
    %cst = arith.constant dense<0.000000e+00> : vector<64x32xf32>
    %5 = tpu.matmul %3, %4, %cst {dimension_numbers = #tpu.dot_dimension_numbers<[1], [0], [0], [1], [0, 0, 1, 1], [], []>} : vector<64x32xf32>, vector<32x32xf32>, vector<64x32xf32> -> vector<64x32xf32>
    %6 = vector.broadcast %2 : vector<1x32xf32> to vector<64x32xf32>
    %7 = arith.addf %5, %6 : vector<64x32xf32>
    %c0_7 = arith.constant 0 : index
    %c0_8 = arith.constant 0 : index
    %8 = vector.load %arg2[%c0_7, %c0_8] : memref<32x32xf32, #tpu.memory_space<vmem>>, vector<32x32xf32>
    %cst_9 = arith.constant 0.000000e+00 : f32
    %9 = vector.broadcast %cst_9 : f32 to vector<8x32xf32>
    %10 = vector.extract_strided_slice %7 {offsets = [0, 0], sizes = [8, 32], strides = [1, 1]} : vector<64x32xf32> to vector<8x32xf32>
    %cst_10 = arith.constant dense<0.000000e+00> : vector<8x32xf32>
    %11 = tpu.matmul %9, %8, %cst_10 {dimension_numbers = #tpu.dot_dimension_numbers<[1], [0], [0], [1], [0, 0, 1, 1], [], []>} : vector<8x32xf32>, vector<32x32xf32>, vector<8x32xf32> -> vector<8x32xf32>
    %12 = arith.addf %10, %11 : vector<8x32xf32>
    %13 = math.tanh %12 : vector<8x32xf32>
    %14 = vector.extract_strided_slice %7 {offsets = [8, 0], sizes = [8, 32], strides = [1, 1]} : vector<64x32xf32> to vector<8x32xf32>
    %cst_11 = arith.constant dense<0.000000e+00> : vector<8x32xf32>
    %15 = tpu.matmul %13, %8, %cst_11 {dimension_numbers = #tpu.dot_dimension_numbers<[1], [0], [0], [1], [0, 0, 1, 1], [], []>} : vector<8x32xf32>, vector<32x32xf32>, vector<8x32xf32> -> vector<8x32xf32>
    %16 = arith.addf %14, %15 : vector<8x32xf32>
    %17 = math.tanh %16 : vector<8x32xf32>
    %18 = vector.extract_strided_slice %7 {offsets = [16, 0], sizes = [8, 32], strides = [1, 1]} : vector<64x32xf32> to vector<8x32xf32>
    %cst_12 = arith.constant dense<0.000000e+00> : vector<8x32xf32>
    %19 = tpu.matmul %17, %8, %cst_12 {dimension_numbers = #tpu.dot_dimension_numbers<[1], [0], [0], [1], [0, 0, 1, 1], [], []>} : vector<8x32xf32>, vector<32x32xf32>, vector<8x32xf32> -> vector<8x32xf32>
    %20 = arith.addf %18, %19 : vector<8x32xf32>
    %21 = math.tanh %20 : vector<8x32xf32>
    %22 = vector.extract_strided_slice %7 {offsets = [24, 0], sizes = [8, 32], strides = [1, 1]} : vector<64x32xf32> to vector<8x32xf32>
    %cst_13 = arith.constant dense<0.000000e+00> : vector<8x32xf32>
    %23 = tpu.matmul %21, %8, %cst_13 {dimension_numbers = #tpu.dot_dimension_numbers<[1], [0], [0], [1], [0, 0, 1, 1], [], []>} : vector<8x32xf32>, vector<32x32xf32>, vector<8x32xf32> -> vector<8x32xf32>
    %24 = arith.addf %22, %23 : vector<8x32xf32>
    %25 = math.tanh %24 : vector<8x32xf32>
    %26 = vector.extract_strided_slice %7 {offsets = [32, 0], sizes = [8, 32], strides = [1, 1]} : vector<64x32xf32> to vector<8x32xf32>
    %cst_14 = arith.constant dense<0.000000e+00> : vector<8x32xf32>
    %27 = tpu.matmul %25, %8, %cst_14 {dimension_numbers = #tpu.dot_dimension_numbers<[1], [0], [0], [1], [0, 0, 1, 1], [], []>} : vector<8x32xf32>, vector<32x32xf32>, vector<8x32xf32> -> vector<8x32xf32>
    %28 = arith.addf %26, %27 : vector<8x32xf32>
    %29 = math.tanh %28 : vector<8x32xf32>
    %30 = vector.extract_strided_slice %7 {offsets = [40, 0], sizes = [8, 32], strides = [1, 1]} : vector<64x32xf32> to vector<8x32xf32>
    %cst_15 = arith.constant dense<0.000000e+00> : vector<8x32xf32>
    %31 = tpu.matmul %29, %8, %cst_15 {dimension_numbers = #tpu.dot_dimension_numbers<[1], [0], [0], [1], [0, 0, 1, 1], [], []>} : vector<8x32xf32>, vector<32x32xf32>, vector<8x32xf32> -> vector<8x32xf32>
    %32 = arith.addf %30, %31 : vector<8x32xf32>
    %33 = math.tanh %32 : vector<8x32xf32>
    %34 = vector.extract_strided_slice %7 {offsets = [48, 0], sizes = [8, 32], strides = [1, 1]} : vector<64x32xf32> to vector<8x32xf32>
    %cst_16 = arith.constant dense<0.000000e+00> : vector<8x32xf32>
    %35 = tpu.matmul %33, %8, %cst_16 {dimension_numbers = #tpu.dot_dimension_numbers<[1], [0], [0], [1], [0, 0, 1, 1], [], []>} : vector<8x32xf32>, vector<32x32xf32>, vector<8x32xf32> -> vector<8x32xf32>
    %36 = arith.addf %34, %35 : vector<8x32xf32>
    %37 = math.tanh %36 : vector<8x32xf32>
    %38 = vector.extract_strided_slice %7 {offsets = [56, 0], sizes = [8, 32], strides = [1, 1]} : vector<64x32xf32> to vector<8x32xf32>
    %cst_17 = arith.constant dense<0.000000e+00> : vector<8x32xf32>
    %39 = tpu.matmul %37, %8, %cst_17 {dimension_numbers = #tpu.dot_dimension_numbers<[1], [0], [0], [1], [0, 0, 1, 1], [], []>} : vector<8x32xf32>, vector<32x32xf32>, vector<8x32xf32> -> vector<8x32xf32>
    %40 = arith.addf %38, %39 : vector<8x32xf32>
    %41 = math.tanh %40 : vector<8x32xf32>
    %c0_18 = arith.constant 0 : index
    %c0_19 = arith.constant 0 : index
    %42 = vector.load %arg5[%c0_18, %c0_19] : memref<32x128xf32, #tpu.memory_space<vmem>>, vector<32x128xf32>
    %cst_20 = arith.constant dense<0.000000e+00> : vector<8x128xf32>
    %43 = tpu.matmul %41, %42, %cst_20 {dimension_numbers = #tpu.dot_dimension_numbers<[1], [0], [0], [1], [0, 0, 1, 1], [], []>} : vector<8x32xf32>, vector<32x128xf32>, vector<8x128xf32> -> vector<8x128xf32>
    %c0_21 = arith.constant 0 : index
    %c0_22 = arith.constant 0 : index
    %44 = vector.load %arg6[%c0_21, %c0_22] : memref<1x128xf32, #tpu.memory_space<vmem>>, vector<1x128xf32>
    %45 = vector.broadcast %44 : vector<1x128xf32> to vector<8x128xf32>
    %46 = arith.addf %43, %45 : vector<8x128xf32>
    %c0_23 = arith.constant 0 : index
    %c0_24 = arith.constant 0 : index
    %47 = vector.load %arg7[%c0_23, %c0_24] : memref<8x128xf32, #tpu.memory_space<vmem>>, vector<8x128xf32>
    tpu.vector_store %arg7[%c0_23, %c0_24], %46 {strides = array<i32>} : memref<8x128xf32, #tpu.memory_space<vmem>>, vector<8x128xf32>,
    return
  }
}

</mosaic_0001>

<bundles_post_ra>
// kernel: tpu_custom_call.1
= control target key start
LH: loop header
LB: loop body
LE: loop exit
PB: predicated region body
PF: predicated region fallthrough
CT: control target
= control target key end

     0   :  { %vm48_vm0 = vcmask 261120   ;;  %v1180_v4 = vmov 0.0|0.0   ;;  %vm1181_vm1 = vmmov 0   ;;  %v1182_v13 = vmov 0.0   ;;  %s1388_s0 = inlined_call_operand.vmem [shape: f32[64,32], index: 0, kind: input, shape index: {}]   ;;  %s1389_s1 = inlined_call_operand.vmem [shape: f32[32,32], index: 1, kind: input, shape index: {}]   ;;  %s1390_s2 = inlined_call_operand.vmem [shape: f32[32,32], index: 2, kind: input, shape index: {}]   ;;  %s1391_s3 = inlined_call_operand.vmem [shape: f32[1,32], index: 3, kind: input, shape index: {}]   ;;  %s1392_s4 = inlined_call_operand.vmem [shape: f32[1,32], index: 4, kind: input, shape index: {}]   ;;  %s1393_s5 = inlined_call_operand.vmem [shape: f32[32,128], index: 5, kind: input, shape index: {}]   ;;  %s1394_s6 = inlined_call_operand.vmem [shape: f32[1,128], index: 6, kind: input, shape index: {}]   ;;  %s1395_s7 = inlined_call_operand.hbm [shape: f32[8,128], index: 7, kind: output, shape index: {}]  }
   0x1   :  { %v38_v0 = vld [vmem:[%s1389_s1] sm:$0xff]  ;;  %v39_v1 = vld [vmem:[%s1389_s1 + $0x8] sm:$0xff]  ;;  %1082 = vmatprep.subr.bf16.mxu1 %v1180_v4  ;;  %v40_v6 = vld [vmem:[%s1389_s1 + $0x10] sm:$0xff]  ;;  %983 = vmatprep.mubr.msk.f32.mxu1 %vm1181_vm1, %v1182_v13 }
   0x2   :  { %v178_v2 = vld [vmem:[%s1390_s2] sm:$0xff]  ;;  %v1074_v3 = vpack.c.bf16 %v39_v1, %v38_v0  ;;  %v179_v5 = vld [vmem:[%s1390_s2 + $0x8] sm:$0xff]  ;;  %v41_v7 = vld [vmem:[%s1389_s1 + $0x18] sm:$0xff] }
   0x3   :  { %v1243_v8 = vpack.c.bf16 %v179_v5, %v178_v2  ;;  %v1078_v9 = vpack.c.bf16 %v41_v7, %v40_v6  ;;  %v30_v10 = vld [vmem:[%s1388_s0] sm:$0xff]  ;;  %v180_v11 = vld [vmem:[%s1390_s2 + $0x10] sm:$0xff]  ;;  %v181_v12 = vld [vmem:[%s1390_s2 + $0x18] sm:$0xff] }
   0x4   :  { %1075 = vmatprep.subr.bf16.mxu0 %v1074_v3  ;;  %963 = vmatprep.mubr.msk.f32.mxu0 %vm48_vm0, %v30_v10  ;;  %v1258_v14 = vpack.c.bf16 %v181_v12, %v180_v11 }
   0x5   :  { %1077 = vmatpush3.bf16.msra.mxu0 %v1074_v3  ;;  %1084 = vmatpush3.bf16.msra.mxu1 %v1243_v8 }
   0x6   :  { %12 = vsyncpa [#allocation3], 0  ;;  %1079 = vmatprep.subr.bf16.mxu0 %v1078_v9  ;;  %1085 = vmatprep.subr.bf16.mxu1 %v1180_v4  ;;  %v31_v15 = vld [vmem:[%s1388_s0 + $0x8] sm:$0xff]  ;;  %v32_v16 = vld [vmem:[%s1388_s0 + $0x10] sm:$0xff]  ;;  %v43_v17 = vlaneseq  ;;  %s1183_s1 = smov [#allocation2]  }
   0x7   :  { %v27_v19 = vld [vmem:[%s1391_s3] sm:$0x1]  ;;  %v33_v31 = vld [vmem:[%s1388_s0 + $0x18] sm:$0xff]  ;;  %v35_v33 = vld [vmem:[%s1388_s0 + $0x28] sm:$0xff] }
   0x8   :  { %v44_v18 = vshrl.u32 %v43_v17, 7  ;;  %v28_v20 = vld [vmem:[%s1392_s4] sm:$0x1]  ;;  %v36_v34 = vld [vmem:[%s1388_s0 + $0x30] sm:$0xff]  ;;  %v37_v35 = vld [vmem:[%s1388_s0 + $0x38] sm:$0xff] }
   0x9   :  { %1081 = vmatpush3.bf16.msra.mxu0 %v1078_v9  ;;  %1087 = vmatpush3.bf16.msra.mxu1 %v1258_v14  ;;  %v29_v21 = vadd.f32 %v28_v20, %v27_v19  ;;  %v34_v32 = vld [vmem:[%s1388_s0 + $0x20] sm:$0xff]  ;;  %v783_v10 = vld [vmem:[%s1393_s5 + $0x8] sm:$0xff]  ;;  %v784_v11 = vld [vmem:[%s1393_s5 + $0x10] sm:$0xff] }
   0xa   :  { %1088 = vmatprep.subr.bf16.mxu1 %v1180_v4  ;;  %1094 = vmatprep.subr.bf16.mxu0 %v1180_v4  ;;  %v45_v22 = vsub.s32 0, %v44_v18  ;;  %v782_v9 = vld [vmem:[%s1393_s5] sm:$0xff] }
   0xb   :  { %v1131_v12 = vpack.c.bf16 %v783_v10, %v782_v9  ;;  %v896_v20 = vld [vmem:[%s1394_s6] ss:$0 sm:$0xff] }
   0xc   :  { %964 = vmatmul.mubr.msk.f32.vlgmr.msra.gmra.mrb[0].mxu0 %vm48_vm0, %v31_v15  ;;  %984 = vmatmul.mubr.f32.vlgmr.msra.gmra.mrb[0].mxu1 %v1182_v13  ;;  %v1289_v23 = vrot.slane %v29_v21, %v45_v22 }
   0xd   :  { %1090 = vmatpush3.bf16.msra.mxu1 %v1243_v8  ;;  %994 = vmatprep.mubr.msk.f32.mxu1 %vm1181_vm1, %v1182_v13 }
   0xe   :  { %1091 = vmatprep.subr.bf16.mxu1 %v1180_v4  ;;  %1096 = vmatpush3.bf16.msra.mxu0 %v1243_v8 }
   0xf   :  { %1097 = vmatprep.subr.bf16.mxu0 %v1180_v4  ;;  %966 = vmatprep.mubr.msk.f32.mxu0 %vm48_vm0, %v32_v16 }
  0x10   :  { %967 = vmatmul.mubr.msk.f32.gmra.mrb[2].mxu0 %vm48_vm0, %v33_v31 }
  0x11   :  { %1093 = vmatpush3.bf16.msra.mxu1 %v1258_v14  ;;  %969 = vmatprep.mubr.msk.f32.mxu0 %vm48_vm0, %v34_v32 }
  0x12   :  { %1099 = vmatpush3.bf16.msra.mxu0 %v1258_v14  ;;  %1100 = vmatprep.subr.bf16.mxu1 %v1180_v4 }
  0x13   :  { %1106 = vmatprep.subr.bf16.mxu0 %v1180_v4 }
  0x14   :  { %970 = vmatmul.mubr.msk.f32.gmra.mrb[4].mxu0 %vm48_vm0, %v35_v33 }
  0x15   :  { %972 = vmatprep.mubr.msk.f32.mxu0 %vm48_vm0, %v36_v34 }
  0x18   :  { %973 = vmatmul.mubr.msk.f32.gmra.mrb[6].mxu0 %vm48_vm0, %v37_v35 }
  0x19   :  { %1005 = vmatprep.mubr.msk.f32.mxu0 %vm1181_vm1, %v1182_v13 }
  0xdf   :  { %v965_v24 = vpop.f32.mrb[0].mxu0  ;;  %v251_v25 = vpop.f32.mrb[0].mxu1 }
  0xe0   :  { %v139_v26 = vpop.f32.mrb[1].mxu0  ;;  %v985_v27 = vpop.f32.mrb[1].mxu1  ;;  %v145_v36 = vadd.f32 %v965_v24, %v1289_v23 }
  0xe1   :  { %v140_v28 = vadd.f32 %v139_v26, %v1289_v23 }
  0xe3   :  { %v255_v29 = vadd.f32 %v251_v25, %v140_v28  ;;  %v968_v41 = vpop.f32.mrb[2].mxu0 }
  0xe4   :  { %v149_v42 = vpop.f32.mrb[3].mxu0  ;;  %v155_v52 = vadd.f32 %v968_v41, %v1289_v23 }
  0xe5   :  { %1140 = vtanh.f32 %v255_v29  ;;  %v150_v47 = vadd.f32 %v149_v42, %v1289_v23 }
  0xe7   :  { %v971_v43 = vpop.f32.mrb[4].mxu0 }
  0xe8   :  { %v159_v44 = vpop.f32.mrb[5].mxu0  ;;  %v165_v62 = vadd.f32 %v971_v43, %v1289_v23 }
  0xe9   :  { %v160_v57 = vadd.f32 %v159_v44, %v1289_v23 }
  0xeb   :  { %v974_v45 = vpop.f32.mrb[6].mxu0 }
  0xec   :  { %v169_v46 = vpop.f32.mrb[7].mxu0  ;;  %v175_v15 = vadd.f32 %v974_v45, %v1289_v23 }
  0xed   :  { %v170_v3 = vadd.f32 %v169_v46, %v1289_v23 }
  0xef   :  { %v1141_v30 = vpop.eup %1140 }
  0xf0   :  { %995 = vmatmul.mubr.msk.f32.vlgmr.msra.gmra.mrb[2].mxu1 %vm48_vm0, %v1141_v30 }
  0xf1   :  { %1102 = vmatpush3.bf16.msra.mxu1 %v1243_v8  ;;  %1016 = vmatprep.mubr.msk.f32.mxu1 %vm1181_vm1, %v1182_v13 }
  0xf2   :  { %1103 = vmatprep.subr.bf16.mxu1 %v1180_v4 }
  0xf5   :  { %1105 = vmatpush3.bf16.msra.mxu1 %v1258_v14 }
  0xf6   :  { %1112 = vmatprep.subr.bf16.mxu1 %v1180_v4 }
 0x1c3   :  { %v326_v37 = vpop.f32.mrb[2].mxu1 }
 0x1c4   :  { %v330_v38 = vadd.f32 %v326_v37, %v145_v36  ;;  %v996_v39 = vpop.f32.mrb[3].mxu1 }
 0x1c6   :  { %1142 = vtanh.f32 %v330_v38 }
 0x1d0   :  { %v1143_v40 = vpop.eup %1142 }
 0x1d1   :  { %1006 = vmatmul.mubr.msk.f32.vlgmr.msra.gmra.mrb[8].mxu0 %vm48_vm0, %v1143_v40 }
 0x1d2   :  { %1108 = vmatpush3.bf16.msra.mxu0 %v1243_v8  ;;  %1027 = vmatprep.mubr.msk.f32.mxu0 %vm1181_vm1, %v1182_v13 }
 0x1d3   :  { %1109 = vmatprep.subr.bf16.mxu0 %v1180_v4 }
 0x1d6   :  { %1111 = vmatpush3.bf16.msra.mxu0 %v1258_v14 }
 0x1d7   :  { %1118 = vmatprep.subr.bf16.mxu0 %v1180_v4 }
 0x2a4   :  { %v401_v48 = vpop.f32.mrb[8].mxu0 }
 0x2a5   :  { %v405_v49 = vadd.f32 %v401_v48, %v150_v47  ;;  %v1007_v50 = vpop.f32.mrb[9].mxu0 }
 0x2a7   :  { %1144 = vtanh.f32 %v405_v49 }
 0x2b1   :  { %v1145_v51 = vpop.eup %1144 }
 0x2b2   :  { %1017 = vmatmul.mubr.msk.f32.vlgmr.msra.gmra.mrb[4].mxu1 %vm48_vm0, %v1145_v51 }
 0x2b3   :  { %1114 = vmatpush3.bf16.msra.mxu1 %v1243_v8  ;;  %1038 = vmatprep.mubr.msk.f32.mxu1 %vm1181_vm1, %v1182_v13 }
 0x2b4   :  { %1115 = vmatprep.subr.bf16.mxu1 %v1180_v4 }
 0x2b7   :  { %1117 = vmatpush3.bf16.msra.mxu1 %v1258_v14 }
 0x2b8   :  { %1124 = vmatprep.subr.bf16.mxu1 %v1180_v4 }
 0x385   :  { %v476_v53 = vpop.f32.mrb[4].mxu1 }
 0x386   :  { %v480_v54 = vadd.f32 %v476_v53, %v155_v52  ;;  %v1018_v55 = vpop.f32.mrb[5].mxu1 }
 0x388   :  { %1146 = vtanh.f32 %v480_v54 }
 0x392   :  { %v1147_v56 = vpop.eup %1146 }
 0x393   :  { %1028 = vmatmul.mubr.msk.f32.vlgmr.msra.gmra.mrb[10].mxu0 %vm48_vm0, %v1147_v56 }
 0x394   :  { %1120 = vmatpush3.bf16.msra.mxu0 %v1243_v8  ;;  %1049 = vmatprep.mubr.msk.f32.mxu0 %vm1181_vm1, %v1182_v13 }
 0x395   :  { %1121 = vmatprep.subr.bf16.mxu0 %v1180_v4 }
 0x398   :  { %1123 = vmatpush3.bf16.msra.mxu0 %v1258_v14 }
 0x399   :  { %1130 = vmatprep.subr.bf16.mxu0 %v1180_v4 }
 0x466   :  { %v551_v58 = vpop.f32.mrb[10].mxu0 }
 0x467   :  { %v555_v59 = vadd.f32 %v551_v58, %v160_v57  ;;  %v1029_v60 = vpop.f32.mrb[11].mxu0 }
 0x469   :  { %1148 = vtanh.f32 %v555_v59 }
 0x473   :  { %v1149_v61 = vpop.eup %1148 }
 0x474   :  { %1039 = vmatmul.mubr.msk.f32.vlgmr.msra.gmra.mrb[6].mxu1 %vm48_vm0, %v1149_v61 }
 0x475   :  { %1126 = vmatpush3.bf16.msra.mxu1 %v1243_v8  ;;  %1060 = vmatprep.mubr.msk.f32.mxu1 %vm1181_vm1, %v1182_v13 }
 0x476   :  { %1127 = vmatprep.subr.bf16.mxu1 %v1180_v4 }
 0x479   :  { %1129 = vmatpush3.bf16.msra.mxu1 %v1258_v14 }
 0x547   :  { %v626_v63 = vpop.f32.mrb[6].mxu1 }
 0x548   :  { %v630_v0 = vadd.f32 %v626_v63, %v165_v62  ;;  %v1040_v1 = vpop.f32.mrb[7].mxu1 }
 0x54a   :  { %1150 = vtanh.f32 %v630_v0 }
 0x554   :  { %v1151_v2 = vpop.eup %1150 }
 0x555   :  { %1050 = vmatmul.mubr.msk.f32.vlgmr.msra.gmra.mrb[12].mxu0 %vm48_vm0, %v1151_v2 }
 0x556   :  { %1071 = vmatprep.mubr.msk.f32.mxu0 %vm1181_vm1, %v1182_v13  ;;  %v785_v13 = vld [vmem:[%s1393_s5 + $0x18] sm:$0xff]  ;;  %1132 = vmatpush3.bf16.msra.mxu0 %v1131_v12  ;;  %s873_s5 = sshll.u32 %s1183_s1, 4  ;;  %s874_s5 = int_to_ptr.vmem [resolvable:$true] %s873_s5 }
 0x557   :  { %v1134_v14 = vpack.c.bf16 %v785_v13, %v784_v11  ;;  %1133 = vmatprep.subr.bf16.mxu0 %v1180_v4  ;;  %s1156_s2 = scalar_lea.vmem %s874_s5, 128  ;;  %p1161_p1 = scmp.lt.s32.totalorder %s874_s5, %s874_s5 }
 0x558   :  { %p1157_p0 = scmp.ne.s32.totalorder %s874_s5, %s1156_s2  ;;  %p1162_p2 = scmp.lt.s32.totalorder %s1156_s2, %s1156_s2 }
 0x55a   :  { %1135 = vmatpush3.bf16.msra.mxu0 %v1134_v14  ;;  %p1163_p3 = por %p1162_p2, %p1161_p1 }
 0x55c   :  { %p1164_p4 = pnand %p1163_p3, %p1157_p0 }
 0x628   :  { %v701_v5 = vpop.f32.mrb[12].mxu0 }
 0x629   :  { %v705_v6 = vadd.f32 %v701_v5, %v170_v3  ;;  %v1051_v7 = vpop.f32.mrb[13].mxu0 }
 0x62b   :  { %1152 = vtanh.f32 %v705_v6 }
 0x635   :  { %v1153_v8 = vpop.eup %1152 }
 0x636   :  { %1061 = vmatmul.mubr.msk.f32.vlgmr.msra.gmra.mrb[8].mxu1 %vm48_vm0, %v1153_v8 }
 0x709   :  { %v776_v16 = vpop.f32.mrb[8].mxu1 }
 0x70a   :  { %v780_v17 = vadd.f32 %v776_v16, %v175_v15  ;;  %v1062_v18 = vpop.f32.mrb[9].mxu1 }
 0x70c   :  { %1154 = vtanh.f32 %v780_v17 }
 0x716   :  { %v1155_v19 = vpop.eup %1154 }
 0x717   :  { %1072 = vmatmul.mubr.msk.f32.vlgmr.msra.gmra.mrb[14].mxu0 %vm48_vm0, %v1155_v19 }
 0x7ea   :  { %v862_v21 = vpop.f32.mrb[14].mxu0 }
 0x7eb   :  { %v863_v22 = vadd.f32 %v896_v20, %v862_v21  ;;  %v1073_v24 = vpop.f32.mrb[15].mxu0 }
 0x7ed   :  { %866 = vst [vmem:[#allocation2] sm:$0xff] %v863_v22 }
 0x7ee   :  { %1167 = shalt.err (!%p1164_p4)
}
 0x7ef   :  { %s1168_s21 = scalar_lea.hbm %s1395_s7, 128 }
 0x7f0   :  { %p1169_p5 = scmp.ne.s32.totalorder %s1395_s7, %s1168_s21  ;;  %p1172_p6 = scmp.lt.u32.totalorder %s1168_s21, %s1395_s7 }
 0x7f2   :  { %p1174_p7 = pnand %p1172_p6, %p1169_p5 }
 0x7f4   :  { %1177 = shalt.err (!%p1174_p7)
}
 0x7f5   :  { %876 = dma.vmem_to_hbm [thread:$0]  %s874_s5, 128, %s1395_s7, [#allocation3]  }
 0x7f6   :  { %1178 = dma.done.wait [#allocation3], 128  }
 0x7f7   :  { %1179 = vsyncadd [#allocation3], 4294967168 }
 0x7f8   :  { %880 = vsyncpa [#allocation3], 1 }

</bundles_post_ra>
